<compile_context>
chip_gen: v7x
topology: tpu7x:2x2x1
jax: 0.10.0
libtpu: 0.0.40
codegen_flags: <defaults>
</compile_context>

<pallas_src>
import jax
import jax.numpy as jnp
from jax import lax
from jax.experimental import pallas as pl
from jax.experimental.pallas import tpu as pltpu

_PI = 3.141592653589793
_USES_TIME = ('TDistMult', 'TComplEx', 'TeRo')


def _chunk2(x):
    d = x.shape[-1] // 2
    return x[..., :d], x[..., d:]


def _bmv(w, x):
    """Batched broadcast-weighted D-reduction on the MXU.

    w: (TB, 1, D) per-batch weights, x: (TB, n, D).  Returns (TB, n) f32.
    Runs the multiply+reduce on the MXU (f32 accumulation) instead of the
    VPU/XLU.
    """
    out = jnp.einsum('bqd,bkd->bqk', w, x,
                     preferred_element_type=jnp.float32,
                     precision=lax.Precision.HIGHEST)
    return out[:, 0, :]


def _sum_last(x):
    """f32 reduction over the embedding axis via a ones-vector MXU dot."""
    ones = jnp.ones((x.shape[0], 1, x.shape[-1]), dtype=x.dtype)
    return _bmv(ones, x)


def _prod_sum(*factors):
    """sum_d prod_i factors[i][..., d]; folds broadcast factors into the MXU dot
    when exactly one factor is per-negative ("big")."""
    big = [f for f in factors if f.shape[1] != 1]
    small = [f for f in factors if f.shape[1] == 1]
    if len(big) == 1 and small:
        w = small[0]
        for f in small[1:]:
            w = w * f
        return _bmv(w, big[0])
    p = factors[0]
    for f in factors[1:]:
        p = p * f
    return _sum_last(p)


def _make_score_fn(model_name, mode, gamma, embedding_range,
                   rel_is_trig=False, time_is_trig=False):
    """Returns f(head, relation, tail[, time]) -> (TB, n) scores mirroring the
    torch reference.  Operates on blocks (TB, n_i, d_i) with n_i in {1, TN};
    the embedding-dim reduction accumulates in f32 on the MXU."""

    def TransE(h, r, t, tm=None):
        s = h + (r - t) if mode == 'head-batch' else h + r - t
        return gamma - _sum_last(jnp.abs(s))

    def DistMult(h, r, t, tm=None):
        return _prod_sum(h, r, t)

    def TDistMult(h, r, t, tm):
        return _prod_sum(h, r, t, tm)

    def ComplEx(h, r, t, tm=None):
        if mode == 'head-batch':
            re_r, im_r = _chunk2(r)
            re_t, im_t = _chunk2(t)
            re_s = re_r * re_t + im_r * im_t
            im_s = re_r * im_t - im_r * re_t
            if h.shape[1] != 1 and r.shape[1] == 1 and t.shape[1] == 1:
                return _bmv(jnp.concatenate([re_s, im_s], axis=-1), h)
            re_h, im_h = _chunk2(h)
            return _sum_last(re_h * re_s + im_h * im_s)
        re_h, im_h = _chunk2(h)
        re_r, im_r = _chunk2(r)
        re_s = re_h * re_r - im_h * im_r
        im_s = re_h * im_r + im_h * re_r
        if t.shape[1] != 1 and h.shape[1] == 1 and r.shape[1] == 1:
            return _bmv(jnp.concatenate([re_s, im_s], axis=-1), t)
        re_t, im_t = _chunk2(t)
        return _sum_last(re_s * re_t + im_s * im_t)

    def TComplEx(h, r, t, tm):
        if mode == 'head-batch':
            re_r, im_r = _chunk2(r)
            re_t, im_t = _chunk2(t)
            re_s = re_r * re_t + im_r * im_t
            im_s = re_r * im_t - im_r * re_t
            if (h.shape[1] != 1 and r.shape[1] == 1 and t.shape[1] == 1
                    and tm.shape[1] == 1):
                return _bmv(jnp.concatenate([re_s * tm, im_s * tm], axis=-1), h)
            re_h, im_h = _chunk2(h)
            return _sum_last(re_h * re_s * tm + im_h * im_s * tm)
        re_h, im_h = _chunk2(h)
        re_r, im_r = _chunk2(r)
        re_s = re_h * re_r - im_h * im_r
        im_s = re_h * im_r + im_h * re_r
        if (t.shape[1] != 1 and h.shape[1] == 1 and r.shape[1] == 1
                and tm.shape[1] == 1):
            return _bmv(jnp.concatenate([re_s * tm, im_s * tm], axis=-1), t)
        re_t, im_t = _chunk2(t)
        return _sum_last(re_s * re_t * tm + im_s * im_t * tm)

    def RotatE(h, r, t, tm=None):
        re_h, im_h = _chunk2(h)
        re_t, im_t = _chunk2(t)
        if rel_is_trig:
            re_r, im_r = _chunk2(r)            # cos/sin precomputed in wrapper
        else:
            phase = r / (embedding_range / _PI)
            re_r, im_r = jnp.cos(phase), jnp.sin(phase)
        if mode == 'head-batch':
            re_s = re_r * re_t + im_r * im_t - re_h
            im_s = re_r * im_t - im_r * re_t - im_h
        else:
            re_s = re_h * re_r - im_h * im_r - re_t
            im_s = re_h * im_r + im_h * re_r - im_t
        s = jnp.sqrt(re_s * re_s + im_s * im_s)
        return gamma - _sum_last(s)

    def TeRo(h, r, t, tm):
        # Faithful to the torch reference (including the minus sign in img_h /
        # img_t and the redundant abs inside the final L1 norm).
        re_h, im_h = _chunk2(h)
        re_r, im_r = _chunk2(r)
        re_t, im_t = _chunk2(t)
        if time_is_trig:
            c, s = _chunk2(tm)                 # cos/sin precomputed in wrapper
        else:
            re_tm, im_tm = _chunk2(tm)
            c, s = jnp.cos(re_tm), jnp.sin(im_tm)
        real_h = re_h * c - im_h * s
        img_h = re_h * s - im_h * c
        real_t = re_t * c - im_t * s
        img_t = re_t * s - im_t * c
        if mode == 'head-batch':
            re_s = jnp.abs(real_h + (re_r - real_t))
            im_s = jnp.abs(img_h + (im_r - img_t))
        else:
            re_s = jnp.abs(real_h + re_r - real_t)
            im_s = jnp.abs(img_h + im_r - img_t)
        return gamma - _sum_last(jnp.abs(re_s + im_s))

    funcs = {'TransE': TransE, 'DistMult': DistMult, 'ComplEx': ComplEx,
             'TDistMult': TDistMult, 'TComplEx': TComplEx, 'RotatE': RotatE,
             'TeRo': TeRo}
    if model_name not in funcs:
        raise ValueError('model %s not supported' % model_name)
    return funcs[model_name]


def _make_kge_kernel(score_fn, n_ops):
    def kernel(*refs):
        vals = [r[...] for r in refs[:n_ops]]
        o_ref = refs[n_ops]
        o_ref[...] = score_fn(*vals).astype(o_ref.dtype)
    return kernel


def _vmem_budget():
    """(per-big-block byte budget, vmem_limit_bytes) derived per generation."""
    mib = 1024 * 1024
    try:
        cap = int(pltpu.get_tpu_info().vmem_capacity_bytes)
    except Exception:
        cap = None
    if cap is not None and cap <= 96 * mib:        # v7x-class: 64 MiB per TC
        return 3 * mib, 48 * mib
    if cap is None:                                # unknown: stay conservative
        return 4 * mib, 48 * mib
    return 7 * mib, 64 * mib                       # v5e / v6e: 128 MiB VMEM


def _pick_tiles(Bq, N, row_bytes, budget):
    """Tiles for the (batch, negative-sample) grid.

    Chosen so every block satisfies the (8, 128) rule WITHOUT padding the
    operands (ragged last blocks handled by the cdiv grid):
      big block (TB, TN, D): TN multiple of 8 or == N, D full;
      out block (TB, TN):    TB multiple of 8 or == B, TN multiple of 128 or == N.
    """
    row_bytes = max(1, row_bytes)
    if N < 128:
        tn = N                                      # full extent (tiny problem)
    else:
        cap = max(128, (budget // (8 * row_bytes)) // 128 * 128)
        tn = min(512, cap, (N // 128) * 128)
        if Bq == 1 and N >= 256:                    # v7x megacore: >=2 N tiles
            tn = min(tn, max(128, (N // 256) * 128))
    n_tiles = -(-N // tn)
    if Bq <= 8:
        tb = Bq
    else:
        tb = (budget // (tn * row_bytes)) // 8 * 8
        tb = int(max(8, min(tb, 64, (Bq // 8) * 8)))
        if n_tiles == 1 and Bq >= 16:               # keep >=2 batch tiles
            tb = min(tb, max(8, (Bq // 16) * 8))
    return tb, tn


def kge_score(head, relation, tail, time, *, model_name, mode, gamma,
              embedding_range):
    """Operands shaped (B, n_i, d_i) with n_i in {1, N}.  Returns (B, N) f32."""
    rel_is_trig = False
    time_is_trig = False

    # Hoist broadcast-operand transcendentals out of the kernel (otherwise they
    # are recomputed for every negative-sample tile on the single EUP slot).
    if model_name == 'RotatE' and relation.shape[1] == 1:
        phase = relation / (embedding_range / _PI)
        relation = jnp.concatenate([jnp.cos(phase), jnp.sin(phase)], axis=-1)
        rel_is_trig = True
    if model_name == 'TeRo' and time is not None and time.shape[1] == 1:
        re_tm, im_tm = _chunk2(time)
        time = jnp.concatenate([jnp.cos(re_tm), jnp.sin(im_tm)], axis=-1)
        time_is_trig = True

    operands = [head, relation, tail]
    if model_name in _USES_TIME:
        assert time is not None, 'model %s needs a time operand' % model_name
        operands.append(time)

    Bq = head.shape[0]
    N = max(op.shape[1] for op in operands)
    for op in operands:
        assert op.shape[0] == Bq and op.shape[1] in (1, N), op.shape

    big_row_bytes = sum(op.shape[2] * jnp.dtype(op.dtype).itemsize
                        for op in operands
                        if not (op.shape[1] == 1 and N > 1))
    budget, vmem_limit = _vmem_budget()
    tb, tn = _pick_tiles(Bq, N, big_row_bytes, budget)

    in_specs = []
    for op in operands:
        d = op.shape[2]
        if op.shape[1] == 1 and N > 1:
            # Broadcast operand: same block for every negative-sample tile.
            in_specs.append(pl.BlockSpec((tb, 1, d), lambda b, n: (b, 0, 0)))
        else:
            in_specs.append(pl.BlockSpec((tb, tn, d), lambda b, n: (b, n, 0)))

    score_fn = _make_score_fn(model_name, mode, gamma, embedding_range,
                              rel_is_trig=rel_is_trig,
                              time_is_trig=time_is_trig)
    kernel = _make_kge_kernel(score_fn, len(operands))

    return pl.pallas_call(
        kernel,
        out_shape=jax.ShapeDtypeStruct((Bq, N), jnp.float32),
        grid=(pl.cdiv(Bq, tb), pl.cdiv(N, tn)),
        in_specs=in_specs,
        out_specs=pl.BlockSpec((tb, tn), lambda b, n: (b, n)),
        compiler_params=pltpu.CompilerParams(
            dimension_semantics=("parallel", "parallel"),
            vmem_limit_bytes=vmem_limit),
    )(*operands)


class Args:
    def __init__(self, kge, dim, gamma):
        self.kge = kge
        self.dim = dim
        self.gamma = gamma


def kge_forward(sample, ent_emb, rel_emb, time_emb, mode, args):
    """JAX/Pallas equivalent of KGEModel.forward."""
    gamma = float(args.gamma)
    epsilon = 2.0
    embedding_range = (gamma + epsilon) / args.dim
    kw = dict(model_name=args.kge, mode=mode, gamma=gamma,
              embedding_range=embedding_range)
    need_time = args.kge in _USES_TIME

    if mode == 'single':
        B = sample.shape[0]
        # Lay the B samples along the "negative sample" axis of a pseudo
        # (batch=1) problem so scores land lane-dense as (1, B).
        head = jnp.take(ent_emb, sample[:, 0], axis=0)[None, :, :]
        relation = jnp.take(rel_emb, sample[:, 1], axis=0)[None, :, :]
        tail = jnp.take(ent_emb, sample[:, 2], axis=0)[None, :, :]
        time = (jnp.take(time_emb, sample[:, 3], axis=0)[None, :, :]
                if need_time else None)
        score = kge_score(head, relation, tail, time, **kw)   # (1, B)
        return score.reshape(B, 1)

    if mode == 'head-batch':
        tail_part, head_part = sample
        B, N = head_part.shape
        head = jnp.take(ent_emb, head_part.reshape(-1), axis=0).reshape(B, N, -1)
        relation = jnp.take(rel_emb, tail_part[:, 1], axis=0)[:, None, :]
        tail = jnp.take(ent_emb, tail_part[:, 2], axis=0)[:, None, :]
        time = (jnp.take(time_emb, tail_part[:, 3], axis=0)[:, None, :]
                if need_time else None)
    elif mode == 'tail-batch':
        head_part, tail_part = sample
        B, N = tail_part.shape
        head = jnp.take(ent_emb, head_part[:, 0], axis=0)[:, None, :]
        relation = jnp.take(rel_emb, head_part[:, 1], axis=0)[:, None, :]
        time = (jnp.take(time_emb, head_part[:, 3], axis=0)[:, None, :]
                if need_time else None)
        tail = jnp.take(ent_emb, tail_part.reshape(-1), axis=0).reshape(B, N, -1)
    elif mode == 'rel-batch':
        head_part, tail_part = sample
        B, N = tail_part.shape
        head = jnp.take(ent_emb, head_part[:, 0], axis=0)[:, None, :]
        tail = jnp.take(ent_emb, head_part[:, 2], axis=0)[:, None, :]
        time = (jnp.take(time_emb, head_part[:, 3], axis=0)[:, None, :]
                if need_time else None)
        relation = jnp.take(rel_emb, tail_part.reshape(-1), axis=0).reshape(B, N, -1)
    else:
        # TODO(synk): the `head_part/tail_part is None` (score-against-all-
        # entities) fallbacks of the torch module are not implemented.
        raise ValueError('mode %s not supported' % mode)

    return kge_score(head, relation, tail, time, **kw)


# ----------------------------------------------------------------------------
# Pure-JAX reference (naive torch-faithful formulas) used only for testing.
# ----------------------------------------------------------------------------
def _reference_score(model_name, mode, gamma, embedding_range, h, r, t, tm=None):
    def ssum(x):
        return jnp.sum(x, axis=-1)

    if model_name == 'TransE':
        d = h + (r - t) if mode == 'head-batch' else h + r - t
        return gamma - ssum(jnp.abs(d))
    if model_name == 'DistMult':
        return ssum(h * r * t)
    if model_name == 'TDistMult':
        return ssum(h * r * t * tm)
    if model_name in ('ComplEx', 'TComplEx'):
        re_h, im_h = _chunk2(h)
        re_r, im_r = _chunk2(r)
        re_t, im_t = _chunk2(t)
        if mode == 'head-batch':
            re_s = re_r * re_t + im_r * im_t
            im_s = re_r * im_t - im_r * re_t
            out = re_h * re_s + im_h * im_s
        else:
            re_s = re_h * re_r - im_h * im_r
            im_s = re_h * im_r + im_h * re_r
            out = re_s * re_t + im_s * im_t
        if model_name == 'TComplEx':
            out = out * tm
        return ssum(out)
    if model_name == 'RotatE':
        re_h, im_h = _chunk2(h)
        re_t, im_t = _chunk2(t)
        ph = r / (embedding_range / _PI)
        re_r, im_r = jnp.cos(ph), jnp.sin(ph)
        if mode == 'head-batch':
            re_s = re_r * re_t + im_r * im_t - re_h
            im_s = re_r * im_t - im_r * re_t - im_h
        else:
            re_s = re_h * re_r - im_h * im_r - re_t
            im_s = re_h * im_r + im_h * re_r - im_t
        return gamma - ssum(jnp.sqrt(re_s ** 2 + im_s ** 2))
    if model_name == 'TeRo':
        re_h, im_h = _chunk2(h)
        re_r, im_r = _chunk2(r)
        re_t, im_t = _chunk2(t)
        re_tm, im_tm = _chunk2(tm)
        c, s = jnp.cos(re_tm), jnp.sin(im_tm)
        real_h = re_h * c - im_h * s
        img_h = re_h * s - im_h * c
        real_t = re_t * c - im_t * s
        img_t = re_t * s - im_t * c
        re_s = jnp.abs(real_h + re_r - real_t)
        im_s = jnp.abs(img_h + im_r - img_t)
        return gamma - ssum(jnp.abs(re_s + im_s))
    raise ValueError(model_name)


if __name__ == "__main__":
    n_ent, n_rel, n_time = 50, 10, 20
    dim = 32

    key = jax.random.PRNGKey(0)
    keys = jax.random.split(key, 12)
    ent_emb = jax.random.normal(keys[0], (n_ent, dim), dtype=jnp.float32)
    rel_emb_full = jax.random.normal(keys[1], (n_rel, dim), dtype=jnp.float32)
    # RotatE (as written in the torch module) uses relation dim = dim // 2.
    rel_emb_half = jax.random.normal(keys[2], (n_rel, dim // 2), dtype=jnp.float32)
    time_emb = jax.random.normal(keys[3], (n_time, dim), dtype=jnp.float32)

    def make_sample(k, b):
        ks = jax.random.split(k, 4)
        return jnp.stack([
            jax.random.randint(ks[0], (b,), 0, n_ent),
            jax.random.randint(ks[1], (b,), 0, n_rel),
            jax.random.randint(ks[2], (b,), 0, n_ent),
            jax.random.randint(ks[3], (b,), 0, n_time),
        ], axis=1).astype(jnp.int32)

    def gather(pos, rel_table, neg=None, neg_role=None):
        h = jnp.take(ent_emb, pos[:, 0], axis=0)[:, None, :]
        r = jnp.take(rel_table, pos[:, 1], axis=0)[:, None, :]
        t = jnp.take(ent_emb, pos[:, 2], axis=0)[:, None, :]
        tm = jnp.take(time_emb, pos[:, 3], axis=0)[:, None, :]
        if neg is not None:
            b, n = neg.shape
            table = rel_table if neg_role == 'rel' else ent_emb
            g = jnp.take(table, neg.reshape(-1), axis=0).reshape(b, n, -1)
            if neg_role == 'head':
                h = g
            elif neg_role == 'tail':
                t = g
            else:
                r = g
        return h, r, t, tm

    gamma = 12.0
    emb_range = (gamma + 2.0) / dim
    tol = dict(rtol=2e-3, atol=2e-2)
    checks = []

    # 1) RotatE / 'single'  (pseudo (1, B, D) layout -> lane-dense (1, B) scores)
    sample8 = make_sample(keys[4], 8)
    out = kge_forward(sample8, ent_emb, rel_emb_half, time_emb, 'single',
                      Args('RotatE', dim, gamma))
    h, r, t, tm = gather(sample8, rel_emb_half)
    ref = _reference_score('RotatE', 'single', gamma, emb_range, h, r, t, tm)
    checks.append(('RotatE/single', out, ref))

    # 2) TransE / 'head-batch'
    neg_heads = jax.random.randint(keys[5], (8, 12), 0, n_ent).astype(jnp.int32)
    out = kge_forward((sample8, neg_heads), ent_emb, rel_emb_full, time_emb,
                      'head-batch', Args('TransE', dim, gamma))
    h, r, t, tm = gather(sample8, rel_emb_full, neg_heads, 'head')
    ref = _reference_score('TransE', 'head-batch', gamma, emb_range, h, r, t, tm)
    checks.append(('TransE/head-batch', out, ref))

    # 3) RotatE / 'head-batch'  (precomputed cos/sin relation operand)
    out = kge_forward((sample8, neg_heads), ent_emb, rel_emb_half, time_emb,
                      'head-batch', Args('RotatE', dim, gamma))
    h, r, t, tm = gather(sample8, rel_emb_half, neg_heads, 'head')
    ref = _reference_score('RotatE', 'head-batch', gamma, emb_range, h, r, t, tm)
    checks.append(('RotatE/head-batch', out, ref))

    # 4) DistMult / 'tail-batch' with ragged tiles (B=12, N=200) -> MXU fold path
    sample12 = make_sample(keys[6], 12)
    neg_tails = jax.random.randint(keys[7], (12, 200), 0, n_ent).astype(jnp.int32)
    out = kge_forward((sample12, neg_tails), ent_emb, rel_emb_full, time_emb,
                      'tail-batch', Args('DistMult', dim, gamma))
    h, r, t, tm = gather(sample12, rel_emb_full, neg_tails, 'tail')
    ref = _reference_score('DistMult', 'tail-batch', gamma, emb_range, h, r, t, tm)
    checks.append(('DistMult/tail-batch', out, ref))

    # 5) ComplEx / 'head-batch'  (concatenated-weight MXU fold)
    out = kge_forward((sample8, neg_heads), ent_emb, rel_emb_full, time_emb,
                      'head-batch', Args('ComplEx', dim, gamma))
    h, r, t, tm = gather(sample8, rel_emb_full, neg_heads, 'head')
    ref = _reference_score('ComplEx', 'head-batch', gamma, emb_range, h, r, t, tm)
    checks.append(('ComplEx/head-batch', out, ref))

    # 6) TeRo / 'tail-batch'  (time operand + hoisted cos/sin)
    neg_t8 = jax.random.randint(keys[8], (8, 12), 0, n_ent).astype(jnp.int32)
    out = kge_forward((sample8, neg_t8), ent_emb, rel_emb_full, time_emb,
                      'tail-batch', Args('TeRo', dim, gamma))
    h, r, t, tm = gather(sample8, rel_emb_full, neg_t8, 'tail')
    ref = _reference_score('TeRo', 'tail-batch', gamma, emb_range, h, r, t, tm)
    checks.append(('TeRo/tail-batch', out, ref))

    for name, got, ref in checks:
        got = jax.block_until_ready(got)
        assert got.shape == ref.shape, (name, got.shape, ref.shape)
        assert jnp.allclose(got, ref, **tol), (name, got, ref)

    print("KERNEL_OK")
</pallas_src>

<mosaic_0001>
module attributes {stable_mosaic.version = 11 : i64} {
  func.func @kernel(%arg0: i32, %arg1: i32, %arg2: memref<1x8x32xf32, #tpu.memory_space<vmem>>, %arg3: memref<1x8x16xf32, #tpu.memory_space<vmem>>, %arg4: memref<1x8x32xf32, #tpu.memory_space<vmem>>, %arg5: memref<1x8xf32, #tpu.memory_space<vmem>>) attributes {dimension_semantics = [#tpu.dimension_semantics<parallel>, #tpu.dimension_semantics<parallel>], iteration_bounds = array<i64: 1, 1>, scalar_prefetch = 0 : i64, scratch_operands = 0 : i64, tpu.core_type = #tpu.core_type<tc>, window_params = [{transform_indices = @transform_0, window_bounds = array<i64: 1, 8, 32>}, {transform_indices = @transform_1, window_bounds = array<i64: 1, 8, 16>}, {transform_indices = @transform_2, window_bounds = array<i64: 1, 8, 32>}, {transform_indices = @transform_3, window_bounds = array<i64: 1, 8>}]} {
    %c0 = arith.constant 0 : index
    %c0_0 = arith.constant 0 : index
    %c0_1 = arith.constant 0 : index
    %0 = vector.load %arg2[%c0, %c0_0, %c0_1] : memref<1x8x32xf32, #tpu.memory_space<vmem>>, vector<1x8x32xf32>
    %c0_2 = arith.constant 0 : index
    %c0_3 = arith.constant 0 : index
    %c0_4 = arith.constant 0 : index
    %1 = vector.load %arg3[%c0_2, %c0_3, %c0_4] : memref<1x8x16xf32, #tpu.memory_space<vmem>>, vector<1x8x16xf32>
    %c0_5 = arith.constant 0 : index
    %c0_6 = arith.constant 0 : index
    %c0_7 = arith.constant 0 : index
    %2 = vector.load %arg4[%c0_5, %c0_6, %c0_7] : memref<1x8x32xf32, #tpu.memory_space<vmem>>, vector<1x8x32xf32>
    %3 = vector.extract_strided_slice %0 {offsets = [0, 0, 0], sizes = [1, 8, 16], strides = [1, 1, 1]} : vector<1x8x32xf32> to vector<1x8x16xf32>
    %4 = vector.extract_strided_slice %0 {offsets = [0, 0, 16], sizes = [1, 8, 16], strides = [1, 1, 1]} : vector<1x8x32xf32> to vector<1x8x16xf32>
    %5 = vector.extract_strided_slice %2 {offsets = [0, 0, 0], sizes = [1, 8, 16], strides = [1, 1, 1]} : vector<1x8x32xf32> to vector<1x8x16xf32>
    %6 = vector.extract_strided_slice %2 {offsets = [0, 0, 16], sizes = [1, 8, 16], strides = [1, 1, 1]} : vector<1x8x32xf32> to vector<1x8x16xf32>
    %cst = arith.constant 0.139260575 : f32
    %7 = vector.broadcast %cst : f32 to vector<1x8x16xf32>
    %8 = arith.divf %1, %7 : vector<1x8x16xf32>
    %9 = math.cos %8 : vector<1x8x16xf32>
    %10 = math.sin %8 : vector<1x8x16xf32>
    %11 = arith.mulf %3, %9 : vector<1x8x16xf32>
    %12 = arith.mulf %4, %10 : vector<1x8x16xf32>
    %13 = arith.subf %11, %12 : vector<1x8x16xf32>
    %14 = arith.subf %13, %5 : vector<1x8x16xf32>
    %15 = arith.mulf %3, %10 : vector<1x8x16xf32>
    %16 = arith.mulf %4, %9 : vector<1x8x16xf32>
    %17 = arith.addf %15, %16 : vector<1x8x16xf32>
    %18 = arith.subf %17, %6 : vector<1x8x16xf32>
    %19 = arith.mulf %14, %14 : vector<1x8x16xf32>
    %20 = arith.mulf %18, %18 : vector<1x8x16xf32>
    %21 = arith.addf %19, %20 : vector<1x8x16xf32>
    %22 = math.sqrt %21 : vector<1x8x16xf32>
    %cst_8 = arith.constant 1.000000e+00 : f32
    %23 = vector.broadcast %cst_8 : f32 to vector<1x1x16xf32>
    "tpu.trace_start"() <{level = 10 : i32, message = "bqd,bkd->bqk"}> : () -> ()
    %cst_9 = arith.constant dense<0.000000e+00> : vector<1x1x8xf32>
    %24 = tpu.matmul %23, %22, %cst_9 {dimension_numbers = #tpu.dot_dimension_numbers<[2], [2], [1], [1], [0, 0, 0, 1, 1, 1], [0], [0]>, precision = #tpu.contract_precision<fp32>} : vector<1x1x16xf32>, vector<1x8x16xf32>, vector<1x1x8xf32> -> vector<1x1x8xf32>
    "tpu.trace_stop"() : () -> ()
    %25 = vector.shape_cast %24 : vector<1x1x8xf32> to vector<1x8xf32>
    %cst_10 = arith.constant 1.200000e+01 : f32
    %26 = vector.broadcast %cst_10 : f32 to vector<1x8xf32>
    %27 = arith.subf %26, %25 : vector<1x8xf32>
    %c0_11 = arith.constant 0 : index
    %c0_12 = arith.constant 0 : index
    %28 = vector.load %arg5[%c0_11, %c0_12] : memref<1x8xf32, #tpu.memory_space<vmem>>, vector<1x8xf32>
    tpu.vector_store %arg5[%c0_11, %c0_12], %27 {strides = array<i32>} : memref<1x8xf32, #tpu.memory_space<vmem>>, vector<1x8xf32>,
    return
  }
  func.func @transform_0(%arg0: i32, %arg1: i32) -> (i32, i32, i32) {
    %c0_i32 = arith.constant 0 : i32
    %c0_i32_0 = arith.constant 0 : i32
    return %arg0, %arg1, %c0_i32 : i32, i32, i32
  }
  func.func @transform_1(%arg0: i32, %arg1: i32) -> (i32, i32, i32) {
    %c0_i32 = arith.constant 0 : i32
    %c0_i32_0 = arith.constant 0 : i32
    return %arg0, %arg1, %c0_i32 : i32, i32, i32
  }
  func.func @transform_2(%arg0: i32, %arg1: i32) -> (i32, i32, i32) {
    %c0_i32 = arith.constant 0 : i32
    %c0_i32_0 = arith.constant 0 : i32
    return %arg0, %arg1, %c0_i32 : i32, i32, i32
  }
  func.func @transform_3(%arg0: i32, %arg1: i32) -> (i32, i32) {
    %c0_i32 = arith.constant 0 : i32
    return %arg0, %arg1 : i32, i32
  }
}

</mosaic_0001>

<bundles_post_ra>
// kernel: tpu_custom_call.1
= control target key start
LH: loop header
LB: loop body
LE: loop exit
PB: predicated region body
PF: predicated region fallthrough
CT: control target
= control target key end

     0   :  { %8 = vsyncpa [#allocation3], 0  ;;  %s1070_s0 = inlined_call_operand.hbm [shape: f32[1,8,32], index: 0, kind: input, shape index: {}]   ;;  %s1071_s1 = inlined_call_operand.hbm [shape: f32[1,8,16], index: 1, kind: input, shape index: {}]   ;;  %s1072_s2 = inlined_call_operand.hbm [shape: f32[1,8,32], index: 2, kind: input, shape index: {}]   ;;  %s1073_s3 = inlined_call_operand.hbm [shape: f32[1,8], index: 3, kind: output, shape index: {}]  }
   0x1   :  { %9 = vsyncpa [#allocation6], 0 }
   0x2   :  { %10 = vsyncpa [#allocation4], 0  ;;  %s954_s12 = smov [#allocation5]   ;;  %s955_s14 = smov [#allocation2]  }
   0x3   :  { %s27_s13 = sshll.u32 %s954_s12, 4  ;;  %s17_s15 = sshll.u32 %s955_s14, 4  ;;  %s28_s13 = int_to_ptr.vmem [resolvable:$true] %s27_s13  ;;  %s18_s15 = int_to_ptr.vmem [resolvable:$true] %s17_s15 }
   0x4   :  { %s860_s18 = scalar_lea.hbm %s1071_s1, 128 }
   0x5   :  { %p861_p0 = scmp.ne.s32.totalorder %s1071_s1, %s860_s18  ;;  %p864_p1 = scmp.lt.u32.totalorder %s860_s18, %s1071_s1 }
   0x7   :  { %p866_p2 = pnand %p864_p1, %p861_p0 }
   0x9   :  { %869 = shalt.err (!%p866_p2)
}
   0xa   :  { %s870_s23 = scalar_lea.vmem %s28_s13, 128  ;;  %p875_p4 = scmp.lt.s32.totalorder %s28_s13, %s28_s13 }
   0xb   :  { %p871_p3 = scmp.ne.s32.totalorder %s28_s13, %s870_s23  ;;  %p876_p5 = scmp.lt.s32.totalorder %s870_s23, %s870_s23 }
   0xd   :  { %p877_p6 = por %p876_p5, %p875_p4 }
   0xf   :  { %p878_p7 = pnand %p877_p6, %p871_p3 }
  0x11   :  { %881 = shalt.err (!%p878_p7)
}
  0x12   :  { %30 = dma.hbm_to_vmem [thread:$0]  %s1071_s1, 128, %s28_s13, [#allocation6]  }
  0x13   :  { %s882_s28 = scalar_lea.hbm %s1070_s0, 128 }
  0x14   :  { %p883_p8 = scmp.ne.s32.totalorder %s1070_s0, %s882_s28  ;;  %p886_p9 = scmp.lt.u32.totalorder %s882_s28, %s1070_s0 }
  0x16   :  { %p888_p10 = pnand %p886_p9, %p883_p8 }
  0x18   :  { %891 = shalt.err (!%p888_p10)
}
  0x19   :  { %s892_s6 = scalar_lea.vmem %s18_s15, 128  ;;  %p897_p12 = scmp.lt.s32.totalorder %s18_s15, %s18_s15 }
  0x1a   :  { %p893_p11 = scmp.ne.s32.totalorder %s18_s15, %s892_s6  ;;  %p898_p13 = scmp.lt.s32.totalorder %s892_s6, %s892_s6 }
  0x1c   :  { %p899_p0 = por %p898_p13, %p897_p12 }
  0x1e   :  { %p900_p1 = pnand %p899_p0, %p893_p11 }
  0x20   :  { %903 = shalt.err (!%p900_p1)
}
  0x21   :  { %20 = dma.hbm_to_vmem [thread:$0]  %s1070_s0, 128, %s18_s15, [#allocation3]  }
  0x22   :  { %s956_s8 = smov [#allocation7]   ;;  %s904_s12 = scalar_lea.hbm %s1072_s2, 128 }
  0x23   :  { %s37_s9 = sshll.u32 %s956_s8, 4  ;;  %p905_p2 = scmp.ne.s32.totalorder %s1072_s2, %s904_s12  ;;  %s38_s9 = int_to_ptr.vmem [resolvable:$true] %s37_s9 }
  0x24   :  { %p908_p3 = scmp.lt.u32.totalorder %s904_s12, %s1072_s2 }
  0x26   :  { %p910_p4 = pnand %p908_p3, %p905_p2 }
  0x28   :  { %913 = shalt.err (!%p910_p4)
}
  0x29   :  { %s914_s18 = scalar_lea.vmem %s38_s9, 128  ;;  %p919_p6 = scmp.lt.s32.totalorder %s38_s9, %s38_s9 }
  0x2a   :  { %p915_p5 = scmp.ne.s32.totalorder %s38_s9, %s914_s18  ;;  %p920_p7 = scmp.lt.s32.totalorder %s914_s18, %s914_s18 }
  0x2c   :  { %p921_p8 = por %p920_p7, %p919_p6 }
  0x2e   :  { %p922_p9 = pnand %p921_p8, %p915_p5 }
  0x30   :  { %925 = shalt.err (!%p922_p9)
}
  0x31   :  { %40 = dma.hbm_to_vmem [thread:$0]  %s1072_s2, 128, %s38_s9, [#allocation6]  }
  0x32   :  { %948 = dma.done.wait [#allocation3], 128  }
  0x33   :  { %949 = vsyncadd [#allocation3], 4294967168 }
  0x34   :  { %950 = dma.done.wait [#allocation6], 256  }
  0x35   :  { %951 = vsyncadd [#allocation6], 4294967040  ;;  %v51_v0 = vld [vmem:[#allocation5] sm:$0xff]  ;;  %v957_v13 = vmov 683565275   ;;  %s963_s2 = smov 16  }
  0x36   :  { %v1026_v1 = vmul.f32 7.1807833, %v51_v0  ;;  %v958_v15 = vmov 2475754826   ;;  %v959_v17 = vmov 2131351028  }
  0x37   :  { %v960_v19 = vmov 2102212464   ;;  %v961_v21 = vmov 920167782   ;;  %v962_v28 = vmov 1326507024  }
  0x38   :  { %v58_v2 = vand.u32 2139095040, %v1026_v1  ;;  %v55_v4 = vand.u32 2147483647, %v1026_v1  ;;  %vm57_vm7 = vcmp.lt.s32.totalorder %v1026_v1, 0  ;;  %vm147_vm15 = vweird.f32 %v1026_v1  ;;  %s964_s19 = smov 112   ;;  %s969_s20 = smov [#allocation8]  }
  0x39   :  { %s762_s21 = sshll.u32 %s969_s20, 4  ;;  %s763_s21 = int_to_ptr.vmem [resolvable:$true] %s762_s21 }
  0x3a   :  { %v59_v3 = vshrl.u32 %v58_v2, 23  ;;  %v62_v7 = vand.u32 8388607, %v55_v4  ;;  %vm56_vm8 = vcmp.le.f32.partialorder %v55_v4, 0.7853982  ;;  %s926_s22 = scalar_lea.vmem %s763_s21, 16  ;;  %p931_p11 = scmp.lt.s32.totalorder %s763_s21, %s763_s21 }
  0x3b   :  { %p927_p10 = scmp.ne.s32.totalorder %s763_s21, %s926_s22  ;;  %s930_s23 = scalar_lea.vmem %s763_s21, 32 }
  0x3c   :  { %v772_v5 = vadd.s32 4294967169, %v59_v3  ;;  %v63_v10 = vor.u32 8388608, %v62_v7  ;;  %p932_p12 = scmp.lt.s32.totalorder %s930_s23, %s926_s22 }
  0x3e   :  { %v65_v6 = vadd.s32 1, %v772_v5  ;;  %v103_v30 = vshll.u32 %v63_v10, 8  ;;  %p933_p13 = por %p932_p12, %p931_p11 }
  0x40   :  { %vm66_vm0 = vcmp.gt.s32.totalorder %v65_v6, 0  ;;  %p934_p0 = pnand %p933_p13, %p927_p10 }
  0x41   :  { %v67_v8 = vsel %vm66_vm0, %v65_v6, 0  ;;  %vm966_vm0 = vmmov 0  }
  0x42   :  { %v69_v9 = vand.u32 31, %v67_v8  ;;  %v68_v11 = vshrl.u32 %v67_v8, 5 }
  0x44   :  { %v70_v12 = vsub.s32 32, %v69_v9  ;;  %v72_v14 = vshll.u32 %v957_v13, %v69_v9  ;;  %v75_v16 = vshll.u32 %v958_v15, %v69_v9  ;;  %v78_v18 = vshll.u32 %v959_v17, %v69_v9 }
  0x45   :  { %v81_v20 = vshll.u32 %v960_v19, %v69_v9  ;;  %v84_v22 = vshll.u32 %v961_v21, %v69_v9  ;;  %vm87_vm1 = vcmp.lt.s32.totalorder %v68_v11, 1  ;;  %vm90_vm2 = vcmp.lt.s32.totalorder %v68_v11, 4 }
  0x46   :  { %v71_v23 = vshrl.u32 %v957_v13, %v70_v12  ;;  %v73_v24 = vshrl.u32 %v958_v15, %v70_v12  ;;  %v76_v25 = vshrl.u32 %v959_v17, %v70_v12  ;;  %v79_v26 = vshrl.u32 %v960_v19, %v70_v12 }
  0x47   :  { %v82_v27 = vshrl.u32 %v961_v21, %v70_v12  ;;  %v85_v29 = vshrl.u32 %v962_v28, %v70_v12  ;;  %vm88_vm3 = vcmp.lt.s32.totalorder %v68_v11, 2  ;;  %vm89_vm4 = vcmp.lt.s32.totalorder %v68_v11, 3 }
  0x48   :  { %v74_v31 = vor.u32 %v73_v24, %v72_v14  ;;  %v77_v32 = vor.u32 %v76_v25, %v75_v16  ;;  %v80_v33 = vor.u32 %v79_v26, %v78_v18 }
  0x49   :  { %v83_v34 = vor.u32 %v82_v27, %v81_v20  ;;  %v86_v35 = vor.u32 %v85_v29, %v84_v22 }
  0x4a   :  { %v91_v36 = vsel %vm87_vm1, %v71_v23, %v74_v31  ;;  %v92_v37 = vsel %vm90_vm2, %v80_v33, 2102212464  ;;  %v95_v38 = vsel %vm87_vm1, %v74_v31, %v77_v32  ;;  %v99_v39 = vsel %vm87_vm1, %v77_v32, %v80_v33 }
  0x4b   :  { %v93_v40 = vsel %vm89_vm4, %v77_v32, %v92_v37  ;;  %v96_v41 = vsel %vm90_vm2, %v83_v34, 920167782  ;;  %v100_v42 = vsel %vm90_vm2, %v86_v35, 1326507024  ;;  %v52_v35 = vld [vmem:[#allocation7] sm:$0xff]  ;;  %vm300_vm1 = vcmask 130048  }
  0x4c   :  { %v97_v43 = vsel %vm89_vm4, %v80_v33, %v96_v41  ;;  %v101_v44 = vsel %vm89_vm4, %v83_v34, %v100_v42  ;;  %v94_v45 = vsel %vm88_vm3, %v91_v36, %v93_v40  ;;  %v50_v36 = vld [vmem:[#allocation2] sm:$0xff]  ;;  %vm754_vm4 = vcmask 57344  }
  0x4d   :  { %v98_v46 = vsel %vm88_vm3, %v95_v38, %v97_v43  ;;  %v102_v47 = vsel %vm88_vm3, %v99_v39, %v101_v44  ;;  %v110_v52 = vmul.u32 %v103_v30, %v94_v45  ;;  %v965_v39 = vmov 0.0  }
  0x4e   :  { %v1032_v48 = vmul.u32.u64.low %v103_v30, %v102_v47  ;;  %v1033_v49 = vmul.u32.u64.high %v103_v30, %v102_v47, %v1032_v48  ;;  %v1035_v50 = vmul.u32.u64.low %v103_v30, %v98_v46  ;;  %v1036_v51 = vmul.u32.u64.high %v103_v30, %v98_v46, %v1035_v50  ;;  %795 = vmatprep.subr.mxu1 %v965_v39  ;;  %810 = vmatprep.subr.mxu0 %v965_v39 }
  0x4f   :  { %797 = vmatprep.mubr.msk.f32.mxu1 %vm966_vm0, %v965_v39  ;;  %812 = vmatprep.mubr.msk.f32.mxu0 %vm966_vm0, %v965_v39 }
  0x50   :  { %vm112_vm5 = vc.u32 %v1033_v49, %v1035_v50  ;;  %v113_v53 = vadd.s32 1, %v1036_v51  ;;  %v111_v0 = vadd.s32 %v1035_v50, %v1033_v49 }
  0x52   :  { %v114_v54 = vsel %vm112_vm5, %v113_v53, %v1036_v51  ;;  %v967_v53 = vmov 0  }
  0x53   :  { %v115_v55 = vadd.s32 %v114_v54, %v110_v52  ;;  %v302_v54 = vsel %vm300_vm1, 1.0, %v967_v53 }
  0x55   :  { %v116_v56 = vadd.s32 536870912, %v115_v55 }
  0x57   :  { %v117_v57 = vshrl.u32 %v116_v56, 30 }
  0x59   :  { %v118_v58 = vshll.u32 %v117_v57, 30  ;;  %v141_v14 = vsub.s32 4, %v117_v57 }
  0x5b   :  { %v119_v59 = vsub.s32 %v115_v55, %v118_v58  ;;  %v142_v17 = vsel %vm57_vm7, %v141_v14, %v117_v57  ;;  %v374_v55 = vsub.f32 %v302_v54, %v302_v54 }
  0x5c   :  { %v144_v20 = vsel %vm56_vm8, 0, %v142_v17 }
  0x5d   :  { %v121_v60 = vsub.s32 0, %v119_v59  ;;  %v251_v21 = vadd.s32 3, %v144_v20  ;;  %v148_v23 = vand.u32 3, %v144_v20  ;;  %v375_v56 = vand.u32 4294901760, %v374_v55 }
  0x5f   :  { %v773_v61 = vmin.u32 %v121_v60, %v119_v59  ;;  %v252_v22 = vand.u32 3, %v251_v21  ;;  %vm153_vm10 = vcmp.eq.s32.totalorder %v148_v23, 2  ;;  %vm150_vm12 = vcmp.eq.s32.totalorder %v148_v23, 0 }
  0x60   :  { %vm149_vm14 = vcmp.lt.s32.totalorder %v148_v23, 2 }
  0x61   :  { %v123_v62 = vclz %v773_v61  ;;  %vm257_vm9 = vcmp.eq.s32.totalorder %v252_v22, 2  ;;  %vm254_vm11 = vcmp.eq.s32.totalorder %v252_v22, 0  ;;  %vm253_vm13 = vcmp.lt.s32.totalorder %v252_v22, 2 }
  0x62   :  { %v376_v61 = vsub.f32 %v374_v55, %v375_v56 }
  0x63   :  { %v774_v63 = vadd.s32 4294967294, %v123_v62 }
  0x65   :  { %vm775_vm6 = vcmp.lt.s32.totalorder %v774_v63, 0 }
  0x66   :  { %v126_v2 = vsel %vm775_vm6, 0, %v774_v63 }
  0x67   :  { %v127_v3 = vsub.s32 32, %v126_v2  ;;  %v128_v5 = vshll.u32 %v119_v59, %v126_v2  ;;  %v131_v6 = vsub.s32 4294967266, %v126_v2  ;;  %v377_v2 = vand.u32 4294901760, %v376_v61 }
  0x69   :  { %v129_v7 = vshrl.u32 %v111_v0, %v127_v3  ;;  %v132_v8 = vadd.s32 127, %v131_v6 }
  0x6b   :  { %v130_v9 = vor.u32 %v129_v7, %v128_v5  ;;  %v133_v10 = vshll.u32 %v132_v8, 23  ;;  %v968_v8 = vmov 1.0  }
  0x6d   :  { %v134_v11 = vor.u32 4788187, %v133_v10  ;;  %v137_v12 = vcvt.s32.f32 %v130_v9 }
  0x6f   :  { %v135_v13 = vand.u32 2147483647, %v134_v11 }
  0x71   :  { %v138_v15 = vmul.f32 %v137_v12, %v135_v13 }
  0x73   :  { %v139_v16 = vxor.u32 2147483648, %v138_v15 }
  0x75   :  { %v140_v18 = vsel %vm57_vm7, %v139_v16, %v138_v15 }
  0x76   :  { %v143_v19 = vsel %vm56_vm8, %v1026_v1, %v140_v18 }
  0x77   :  { %854 = vcosq.f32 %v143_v19 }
  0x78   :  { %856 = vsinq.f32 %v143_v19 }
  0x81   :  { %v855_v24 = vpop.eup %854 }
  0x82   :  { %v857_v25 = vpop.eup %856  ;;  %v154_v26 = vxor.u32 2147483648, %v855_v24 }
  0x83   :  { %v151_v27 = vxor.u32 2147483648, %v857_v25 }
  0x84   :  { %v259_v4 = vsel %vm257_vm9, %v154_v26, %v857_v25  ;;  %v155_v28 = vsel %vm153_vm10, %v154_v26, %v857_v25 }
  0x85   :  { %v256_v29 = vsel %vm254_vm11, %v855_v24, %v151_v27  ;;  %v152_v30 = vsel %vm150_vm12, %v855_v24, %v151_v27 }
  0x86   :  { %v260_v31 = vsel %vm253_vm13, %v256_v29, %v259_v4  ;;  %v156_v32 = vsel %vm149_vm14, %v152_v30, %v155_v28 }
  0x87   :  { %v261_v33 = vsel %vm147_vm15, nan, %v260_v31  ;;  %v157_v34 = vsel %vm147_vm15, nan, %v156_v32 }
  0x88   :  { %264 = vrot.lane.b32.xlu0 %v261_v33, %s963_s2  ;;  %v262_v41 = vmul.f32 %v157_v34, %v50_v36  ;;  %v274_v43 = vmul.f32 %v261_v33, %v50_v36 }
  0x8c   :  { %276 = vrot.lane.b32.xlu0 %v157_v34, %s963_s2 }
  0x90   :  { %286 = vrot.lane.b32.xlu0 %v52_v35, %s964_s19 }
  0xfa   :  { %v265_v37 = vpop.permute.xlu0 %264 }
  0xfb   :  { %v267_v38 = vmul.f32 %v265_v37, %v50_v36 }
  0xfd   :  { %269 = vrot.lane.b32.xlu1 %v267_v38, %s964_s19 }
  0xfe   :  { %v277_v1 = vpop.permute.xlu0 %276 }
  0xff   :  { %v279_v40 = vmul.f32 %v277_v1, %v50_v36 }
 0x101   :  { %281 = vrot.lane.b32.xlu1 %v279_v40, %s964_s19 }
 0x102   :  { %v287_v46 = vpop.permute.xlu0 %286 }
 0x16f   :  { %v270_v42 = vpop.permute.xlu1 %269 }
 0x170   :  { %v272_v44 = vsub.f32 %v262_v41, %v270_v42 }
 0x172   :  { %v273_v47 = vsub.f32 %v272_v44, %v52_v35 }
 0x173   :  { %v282_v45 = vpop.permute.xlu1 %281 }
 0x174   :  { %v284_v48 = vadd.f32 %v282_v45, %v274_v43  ;;  %v290_v50 = vmul.f32 %v273_v47, %v273_v47 }
 0x176   :  { %v289_v49 = vsub.f32 %v284_v48, %v287_v46 }
 0x178   :  { %v291_v51 = vmul.f32 %v289_v49, %v289_v49 }
 0x17a   :  { %v292_v52 = vadd.f32 %v291_v51, %v290_v50 }
 0x17c   :  { %858 = vrsqrt.f32 %v292_v52  ;;  %vm295_vm2 = vcmp.eq.f32.partialorder %v292_v52, inf  ;;  %v298_v59 = vand.u32 2147483648, %v292_v52  ;;  %vm297_vm3 = vcmp.eq.f32.partialorder %v292_v52, 0.0 }
 0x186   :  { %v859_v57 = vpop.eup %858 }
 0x187   :  { %v294_v58 = vmul.f32 %v859_v57, %v292_v52 }
 0x189   :  { %v296_v60 = vsel %vm295_vm2, %v292_v52, %v294_v58 }
 0x18a   :  { %v299_v62 = vsel %vm297_vm3, %v298_v59, %v296_v60 }
 0x18b   :  { %v305_v63 = vsel %vm300_vm1, %v299_v62, 0 }
 0x18c   :  { %v308_v0 = vand.u32 4294901760, %v305_v63 }
 0x18e   :  { %796 = vmatpush3.xpose.msra.mxu1 %v308_v0  ;;  %v385_v3 = vsub.f32 %v305_v63, %v308_v0  ;;  %811 = vmatpush3.xpose.msra.mxu0 %v308_v0 }
 0x18f   :  { %815 = vmatprep.subr.mxu0 %v965_v39  ;;  %800 = vmatprep.subr.mxu1 %v965_v39 }
 0x190   :  { %v386_v5 = vand.u32 4294901760, %v385_v3 }
 0x191   :  { %798 = vmatmul.mubr.f32.vlgmr.msra.gmra.mrb[0].mxu1 %v377_v2  ;;  %813 = vmatmul.mubr.f32.vlgmr.msra.gmra.mrb[0].mxu0 %v375_v56 }
 0x192   :  { %816 = vmatpush3.xpose.msra.mxu0 %v386_v5  ;;  %v387_v6 = vsub.f32 %v385_v3, %v386_v5  ;;  %802 = vmatprep.mubr.msk.f32.mxu1 %vm966_vm0, %v965_v39 }
 0x193   :  { %817 = vmatprep.mubr.msk.f32.mxu0 %vm966_vm0, %v965_v39  ;;  %820 = vmatprep.subr.mxu0 %v965_v39 }
 0x194   :  { %v388_v7 = vand.u32 4294901760, %v387_v6 }
 0x196   :  { %801 = vmatpush3.xpose.msra.mxu1 %v388_v7 }
 0x197   :  { %805 = vmatprep.subr.mxu1 %v965_v39 }
 0x199   :  { %803 = vmatmul.mubr.msk.f32.vlgmr.msra.gmra.mrb[0].mxu1 %vm300_vm1, %v968_v8  ;;  %818 = vmatmul.mubr.msk.f32.vlgmr.msra.gmra.mrb[0].mxu0 %vm300_vm1, %v968_v8 }
 0x19a   :  { %821 = vmatpush3.xpose.msra.mxu0 %v308_v0  ;;  %806 = vmatpush3.xpose.msra.mxu1 %v385_v3 }
 0x19b   :  { %807 = vmatprep.mubr.msk.f32.mxu1 %vm966_vm0, %v965_v39  ;;  %822 = vmatprep.mubr.msk.f32.mxu0 %vm966_vm0, %v965_v39 }
 0x1a1   :  { %808 = vmatmul.mubr.f32.vlgmr.msra.gmra.mrb[0].mxu1 %v374_v55  ;;  %823 = vmatmul.mubr.msk.f32.vlgmr.msra.gmra.mrb[0].mxu0 %vm300_vm1, %v968_v8 }
 0x274   :  { %v529_v9 = vpop.f32.mrb[0].mxu1  ;;  %v749_v10 = vpop.f32.mrb[0].mxu0 }
 0x275   :  { %v825_v11 = vadd.f32 %v749_v10, %v529_v9  ;;  %v809_v12 = vpop.f32.mrb[1].mxu1  ;;  %v824_v13 = vpop.f32.mrb[1].mxu0 }
 0x277   :  { %v753_v14 = vsub.f32 12.0, %v825_v11 }
 0x279   :  { %755 = vst.msk [vmem:[#allocation8] sm:$0x1] %vm754_vm4, %v753_v14 }
 0x27a   :  { %937 = shalt.err (!%p934_p0)
}
 0x27b   :  { %s938_s26 = scalar_lea.hbm %s1073_s3, 16 }
 0x27c   :  { %p939_p1 = scmp.ne.s32.totalorder %s1073_s3, %s938_s26  ;;  %p942_p2 = scmp.lt.u32.totalorder %s938_s26, %s1073_s3 }
 0x27e   :  { %p944_p3 = pnand %p942_p2, %p939_p1 }
 0x280   :  { %947 = shalt.err (!%p944_p3)
}
 0x281   :  { %765 = dma.vmem_to_hbm [thread:$0]  %s763_s21, 16, %s1073_s3, [#allocation4]  }
 0x282   :  { %952 = dma.done.wait [#allocation4], 16  }
 0x283   :  { %953 = vsyncadd [#allocation4], 4294967280 }
 0x284   :  { %769 = vsyncpa [#allocation3], 1 }
 0x285   :  { %770 = vsyncpa [#allocation6], 1 }
 0x286   :  { %771 = vsyncpa [#allocation4], 1 }

</bundles_post_ra>
